<compile_context>
chip_gen: v7x
topology: tpu7x:2x2x1
jax: 0.10.0
libtpu: 0.0.40
codegen_flags: <defaults>
</compile_context>

<pallas_src>
import jax
import jax.numpy as jnp
from jax.experimental import pallas as pl
from jax.experimental.pallas import tpu as pltpu


def _round_up(x, m):
    return ((x + m - 1) // m) * m


def _cdiv(a, b):
    return -(-a // b)


def _xpinn_kernel(x_ref, *refs):
    # refs = [w0, b0, w1, b1, ..., wL, bL, out_ref]; scales already folded in.
    out_ref = refs[-1]
    wb = refs[:-1]
    n_layers = len(wb) // 2
    cdt = x_ref.dtype                            # hidden / tanh compute dtype

    h = x_ref[...]                               # (d_in, tile), batch on lanes
    for i in range(n_layers):
        w = wb[2 * i][...]                       # (d_out_i, d_in_i) PyTorch layout
        b = wb[2 * i + 1][...]                   # (d_out_i, 1) float32
        k = w.shape[1]
        if i == 0 and k <= 4:
            # Tiny contraction dim ((x, t) coords): K broadcast multiply-adds
            # on the VPU instead of an almost-empty MXU pass.
            z = w[:, 0:1] * h[0:1, :] + b
            for kk in range(1, k):
                z = z + w[:, kk:kk + 1] * h[kk:kk + 1, :]
        else:
            # MXU matmul, f32 accumulate.  The steady-state bottleneck at
            # large tiles is the EUP tanh (~96 transcendentals/point vs ~12
            # HBM bytes/point); these small matmuls ride along for free.
            z = jnp.dot(w, h, preferred_element_type=jnp.float32) + b
        if i < n_layers - 1:
            h = jnp.tanh(z.astype(cdt))          # EUP tanh (bf16-capable on v6e/v7x)
        else:
            out_ref[...] = z.astype(out_ref.dtype)


def xpinn_forward_feature_major(xt, weights, biases, activations, *,
                                tile_m=8192, compute_dtype=jnp.float32):
    """Core entry point, no layout copies.

    xt: (d_in, N) feature-major collocation points.
    weights[i]: PyTorch-layout (d_{i+1}, d_i); biases[i]: (d_{i+1}, 1);
    activations: (num_hidden,) float32.  Returns (d_out, N) float32.
    """
    d_in, n = xt.shape
    d_out = weights[-1].shape[0]
    n_layers = len(weights)

    # Fold tanh(20*a_i*(W h + b)) == tanh((20*a_i*W) h + (20*a_i*b)) into the
    # tiny hidden-layer weights/biases (wrapper-side, a few KB of data).
    fw, fb = [], []
    for i, (w, b) in enumerate(zip(weights, biases)):
        if i < n_layers - 1:
            s = 20.0 * activations[i]
            w, b = s * w, s * b
        fw.append(w.astype(compute_dtype))
        fb.append(b.astype(jnp.float32))

    # Batch tile: as large as requested (amortizes the ~0.35us per-step
    # overhead), multiple of 256, but capped at ceil(N/2) so the "parallel"
    # grid axis has >=2 steps whenever possible (dual-TC sharding on v7x).
    tile = min(_round_up(tile_m, 256),
               _round_up(max(n, 1), 256),
               _round_up(_cdiv(max(n, 1), 2), 256))
    grid = (_cdiv(n, tile),)

    args = [xt.astype(compute_dtype)]
    in_specs = [pl.BlockSpec((d_in, tile), lambda i: (0, i))]
    for w, b in zip(fw, fb):
        args += [w, b]
        # Constant index maps: weights/biases are DMA'd once and stay
        # VMEM-resident across all batch tiles.
        in_specs += [pl.BlockSpec(w.shape, lambda i: (0, 0)),
                     pl.BlockSpec(b.shape, lambda i: (0, 0))]

    # Advisory cost estimate for XLA scheduling around surrounding PINN ops.
    dims = [w.shape for w in weights]
    itemsize = jnp.dtype(compute_dtype).itemsize
    flops = int(2 * n * sum(o * k for o, k in dims))
    transcendentals = int(n * sum(o for o, _ in dims[:-1]))
    bytes_accessed = int(itemsize * d_in * n + 4 * d_out * n
                         + sum(int(w.size) * itemsize + int(b.size) * 4
                               for w, b in zip(fw, fb)))

    out = pl.pallas_call(
        _xpinn_kernel,
        out_shape=jax.ShapeDtypeStruct((d_out, n), jnp.float32),
        grid_spec=pltpu.PrefetchScalarGridSpec(
            num_scalar_prefetch=0,
            grid=grid,
            in_specs=in_specs,
            out_specs=pl.BlockSpec((d_out, tile), lambda i: (0, i)),
        ),
        compiler_params=pltpu.CompilerParams(
            dimension_semantics=("parallel",),
            # Above the 16/32 MiB default scoped limit (v5e/v6e), below v7x's
            # 64 MiB physical VMEM; ample for the double-buffered x/out blocks
            # plus the (32, tile) f32 temporaries at tile=8K-16K.
            vmem_limit_bytes=48 * 1024 * 1024,
        ),
        cost_estimate=pl.CostEstimate(flops=flops,
                                      transcendentals=transcendentals,
                                      bytes_accessed=bytes_accessed),
    )(*args)
    return out


def xpinn_forward(x, weights, biases, activations, *, tile_m=8192,
                  compute_dtype=jnp.float32):
    """Convenience wrapper taking x as (N, d_in), matching the PyTorch module.

    NOTE: the transpose to feature-major is an extra full-batch XLA copy; keep
    collocation points in (d_in, N) layout upstream and call
    xpinn_forward_feature_major directly to avoid it.
    """
    out_fm = xpinn_forward_feature_major(
        jnp.transpose(x), weights, biases, activations,
        tile_m=tile_m, compute_dtype=compute_dtype)
    return jnp.transpose(out_fm).astype(x.dtype)


def init_params(layers, key):
    """Matches the PyTorch module: xavier_normal_ weights (PyTorch layout
    (out, in)), zero biases, activation params a_i = 0.05."""
    weights, biases = [], []
    for i in range(len(layers) - 1):
        fan_in, fan_out = layers[i], layers[i + 1]
        key, sub = jax.random.split(key)
        std = jnp.sqrt(2.0 / (fan_in + fan_out))
        weights.append(std * jax.random.normal(sub, (fan_out, fan_in), jnp.float32))
        biases.append(jnp.zeros((fan_out, 1), jnp.float32))
    activations = jnp.full((len(layers) - 2,), 0.05, jnp.float32)
    return weights, biases, activations


def reference_forward(x, weights, biases, activations):
    """Pure-JAX reference (unfolded scales), full-precision matmuls."""
    hp = jax.lax.Precision.HIGHEST
    h = x
    n = len(weights)
    for i in range(n):
        h = jnp.dot(h, weights[i].T, precision=hp) + biases[i].T
        if i < n - 1:
            h = jnp.tanh(20.0 * activations[i] * h)
    return h


if __name__ == "__main__":
    # XPINN takes (x, t) coordinate pairs -> scalar solution value.
    layers = [2, 32, 32, 32, 1]

    key = jax.random.PRNGKey(0)
    key, kp = jax.random.split(key)
    weights, biases, activations = init_params(layers, kp)

    # Tolerance covers possible MXU bf16-pass rounding in either the kernel or
    # the XLA reference; any semantic bug (wrong scale, missing tanh, wrong
    # layer order) would produce O(0.1+) differences.
    ATOL = RTOL = 5e-3

    # Case 1: tiny batch -> single (ragged, masked) tile via the (N, d_in) API.
    key, kx = jax.random.split(key)
    x_small = jax.random.normal(kx, (8, layers[0]), jnp.float32)
    out_small = jax.block_until_ready(
        xpinn_forward(x_small, weights, biases, activations))
    ref_small = reference_forward(x_small, weights, biases, activations)
    assert out_small.shape == (8, layers[-1])
    assert jnp.allclose(out_small, ref_small, atol=ATOL, rtol=RTOL)

    # Case 2: multi-tile grid with a ragged last tile (no wrapper padding).
    key, kx = jax.random.split(key)
    x_big = jax.random.normal(kx, (300, layers[0]), jnp.float32)
    out_big = jax.block_until_ready(
        xpinn_forward(x_big, weights, biases, activations, tile_m=256))
    ref_big = reference_forward(x_big, weights, biases, activations)
    assert out_big.shape == (300, layers[-1])
    assert jnp.allclose(out_big, ref_big, atol=ATOL, rtol=RTOL)

    # Case 3: feature-major (copy-free) entry point agrees with the wrapper.
    out_fm = jax.block_until_ready(
        xpinn_forward_feature_major(jnp.transpose(x_big), weights, biases,
                                    activations, tile_m=256))
    assert out_fm.shape == (layers[-1], 300)
    assert jnp.allclose(jnp.transpose(out_fm), ref_big, atol=ATOL, rtol=RTOL)

    print("KERNEL_OK")
</pallas_src>

<mosaic_0001>
module attributes {stable_mosaic.version = 11 : i64} {
  func.func @_xpinn_kernel(%arg0: i32, %arg1: memref<2x256xf32, #tpu.memory_space<vmem>>, %arg2: memref<32x2xf32, #tpu.memory_space<vmem>>, %arg3: memref<32x1xf32, #tpu.memory_space<vmem>>, %arg4: memref<32x32xf32, #tpu.memory_space<vmem>>, %arg5: memref<32x1xf32, #tpu.memory_space<vmem>>, %arg6: memref<32x32xf32, #tpu.memory_space<vmem>>, %arg7: memref<32x1xf32, #tpu.memory_space<vmem>>, %arg8: memref<1x32xf32, #tpu.memory_space<vmem>>, %arg9: memref<1x1xf32, #tpu.memory_space<vmem>>, %arg10: memref<1x256xf32, #tpu.memory_space<vmem>>) attributes {dimension_semantics = [#tpu.dimension_semantics<parallel>], iteration_bounds = array<i64: 1>, scalar_prefetch = 0 : i64, scratch_operands = 0 : i64, tpu.core_type = #tpu.core_type<tc>, window_params = [{transform_indices = @transform_0, window_bounds = array<i64: 2, 256>}, {pipeline_mode = #tpu.pipeline_mode<synchronous>, transform_indices = @transform_1, window_bounds = array<i64: 32, 2>}, {pipeline_mode = #tpu.pipeline_mode<synchronous>, transform_indices = @transform_2, window_bounds = array<i64: 32, 1>}, {pipeline_mode = #tpu.pipeline_mode<synchronous>, transform_indices = @transform_3, window_bounds = array<i64: 32, 32>}, {pipeline_mode = #tpu.pipeline_mode<synchronous>, transform_indices = @transform_4, window_bounds = array<i64: 32, 1>}, {pipeline_mode = #tpu.pipeline_mode<synchronous>, transform_indices = @transform_5, window_bounds = array<i64: 32, 32>}, {pipeline_mode = #tpu.pipeline_mode<synchronous>, transform_indices = @transform_6, window_bounds = array<i64: 32, 1>}, {pipeline_mode = #tpu.pipeline_mode<synchronous>, transform_indices = @transform_7, window_bounds = array<i64: 1, 32>}, {pipeline_mode = #tpu.pipeline_mode<synchronous>, transform_indices = @transform_8, window_bounds = array<i64: 1, 1>}, {transform_indices = @transform_9, window_bounds = array<i64: 1, 256>}]} {
    %c0 = arith.constant 0 : index
    %c0_0 = arith.constant 0 : index
    %0 = vector.load %arg1[%c0, %c0_0] : memref<2x256xf32, #tpu.memory_space<vmem>>, vector<2x256xf32>
    %c0_1 = arith.constant 0 : index
    %c0_2 = arith.constant 0 : index
    %1 = vector.load %arg2[%c0_1, %c0_2] : memref<32x2xf32, #tpu.memory_space<vmem>>, vector<32x2xf32>
    %c0_3 = arith.constant 0 : index
    %c0_4 = arith.constant 0 : index
    %2 = vector.load %arg3[%c0_3, %c0_4] : memref<32x1xf32, #tpu.memory_space<vmem>>, vector<32x1xf32>
    %3 = vector.extract_strided_slice %1 {offsets = [0, 0], sizes = [32, 1], strides = [1, 1]} : vector<32x2xf32> to vector<32x1xf32>
    %4 = vector.extract_strided_slice %0 {offsets = [0, 0], sizes = [1, 256], strides = [1, 1]} : vector<2x256xf32> to vector<1x256xf32>
    %5 = vector.broadcast %3 : vector<32x1xf32> to vector<32x256xf32>
    %6 = vector.broadcast %4 : vector<1x256xf32> to vector<32x256xf32>
    %7 = arith.mulf %5, %6 : vector<32x256xf32>
    %8 = vector.broadcast %2 : vector<32x1xf32> to vector<32x256xf32>
    %9 = arith.addf %7, %8 : vector<32x256xf32>
    %10 = vector.extract_strided_slice %1 {offsets = [0, 1], sizes = [32, 1], strides = [1, 1]} : vector<32x2xf32> to vector<32x1xf32>
    %11 = vector.extract_strided_slice %0 {offsets = [1, 0], sizes = [1, 256], strides = [1, 1]} : vector<2x256xf32> to vector<1x256xf32>
    %12 = vector.broadcast %10 : vector<32x1xf32> to vector<32x256xf32>
    %13 = vector.broadcast %11 : vector<1x256xf32> to vector<32x256xf32>
    %14 = arith.mulf %12, %13 : vector<32x256xf32>
    %15 = arith.addf %9, %14 : vector<32x256xf32>
    %16 = math.tanh %15 : vector<32x256xf32>
    %c0_5 = arith.constant 0 : index
    %c0_6 = arith.constant 0 : index
    %17 = vector.load %arg4[%c0_5, %c0_6] : memref<32x32xf32, #tpu.memory_space<vmem>>, vector<32x32xf32>
    %c0_7 = arith.constant 0 : index
    %c0_8 = arith.constant 0 : index
    %18 = vector.load %arg5[%c0_7, %c0_8] : memref<32x1xf32, #tpu.memory_space<vmem>>, vector<32x1xf32>
    %cst = arith.constant dense<0.000000e+00> : vector<32x256xf32>
    %19 = tpu.matmul %17, %16, %cst {dimension_numbers = #tpu.dot_dimension_numbers<[1], [0], [0], [1], [0, 0, 1, 1], [], []>} : vector<32x32xf32>, vector<32x256xf32>, vector<32x256xf32> -> vector<32x256xf32>
    %20 = vector.broadcast %18 : vector<32x1xf32> to vector<32x256xf32>
    %21 = arith.addf %19, %20 : vector<32x256xf32>
    %22 = math.tanh %21 : vector<32x256xf32>
    %c0_9 = arith.constant 0 : index
    %c0_10 = arith.constant 0 : index
    %23 = vector.load %arg6[%c0_9, %c0_10] : memref<32x32xf32, #tpu.memory_space<vmem>>, vector<32x32xf32>
    %c0_11 = arith.constant 0 : index
    %c0_12 = arith.constant 0 : index
    %24 = vector.load %arg7[%c0_11, %c0_12] : memref<32x1xf32, #tpu.memory_space<vmem>>, vector<32x1xf32>
    %cst_13 = arith.constant dense<0.000000e+00> : vector<32x256xf32>
    %25 = tpu.matmul %23, %22, %cst_13 {dimension_numbers = #tpu.dot_dimension_numbers<[1], [0], [0], [1], [0, 0, 1, 1], [], []>} : vector<32x32xf32>, vector<32x256xf32>, vector<32x256xf32> -> vector<32x256xf32>
    %26 = vector.broadcast %24 : vector<32x1xf32> to vector<32x256xf32>
    %27 = arith.addf %25, %26 : vector<32x256xf32>
    %28 = math.tanh %27 : vector<32x256xf32>
    %c0_14 = arith.constant 0 : index
    %c0_15 = arith.constant 0 : index
    %29 = vector.load %arg8[%c0_14, %c0_15] : memref<1x32xf32, #tpu.memory_space<vmem>>, vector<1x32xf32>
    %c0_16 = arith.constant 0 : index
    %c0_17 = arith.constant 0 : index
    %30 = vector.load %arg9[%c0_16, %c0_17] : memref<1x1xf32, #tpu.memory_space<vmem>>, vector<1x1xf32>
    %cst_18 = arith.constant dense<0.000000e+00> : vector<1x256xf32>
    %31 = tpu.matmul %29, %28, %cst_18 {dimension_numbers = #tpu.dot_dimension_numbers<[1], [0], [0], [1], [0, 0, 1, 1], [], []>} : vector<1x32xf32>, vector<32x256xf32>, vector<1x256xf32> -> vector<1x256xf32>
    %32 = vector.broadcast %30 : vector<1x1xf32> to vector<1x256xf32>
    %33 = arith.addf %31, %32 : vector<1x256xf32>
    %c0_19 = arith.constant 0 : index
    %c0_20 = arith.constant 0 : index
    %34 = vector.load %arg10[%c0_19, %c0_20] : memref<1x256xf32, #tpu.memory_space<vmem>>, vector<1x256xf32>
    tpu.vector_store %arg10[%c0_19, %c0_20], %33 {strides = array<i32>} : memref<1x256xf32, #tpu.memory_space<vmem>>, vector<1x256xf32>,
    return
  }
  func.func @transform_0(%arg0: i32) -> (i32, i32) {
    %c0_i32 = arith.constant 0 : i32
    %c0_i32_0 = arith.constant 0 : i32
    return %c0_i32, %arg0 : i32, i32
  }
  func.func @transform_1(%arg0: i32) -> (i32, i32) {
    %c0_i32 = arith.constant 0 : i32
    %c0_i32_0 = arith.constant 0 : i32
    %c0_i32_1 = arith.constant 0 : i32
    return %c0_i32, %c0_i32_0 : i32, i32
  }
  func.func @transform_2(%arg0: i32) -> (i32, i32) {
    %c0_i32 = arith.constant 0 : i32
    %c0_i32_0 = arith.constant 0 : i32
    %c0_i32_1 = arith.constant 0 : i32
    return %c0_i32, %c0_i32_0 : i32, i32
  }
  func.func @transform_3(%arg0: i32) -> (i32, i32) {
    %c0_i32 = arith.constant 0 : i32
    %c0_i32_0 = arith.constant 0 : i32
    %c0_i32_1 = arith.constant 0 : i32
    return %c0_i32, %c0_i32_0 : i32, i32
  }
  func.func @transform_4(%arg0: i32) -> (i32, i32) {
    %c0_i32 = arith.constant 0 : i32
    %c0_i32_0 = arith.constant 0 : i32
    %c0_i32_1 = arith.constant 0 : i32
    return %c0_i32, %c0_i32_0 : i32, i32
  }
  func.func @transform_5(%arg0: i32) -> (i32, i32) {
    %c0_i32 = arith.constant 0 : i32
    %c0_i32_0 = arith.constant 0 : i32
    %c0_i32_1 = arith.constant 0 : i32
    return %c0_i32, %c0_i32_0 : i32, i32
  }
  func.func @transform_6(%arg0: i32) -> (i32, i32) {
    %c0_i32 = arith.constant 0 : i32
    %c0_i32_0 = arith.constant 0 : i32
    %c0_i32_1 = arith.constant 0 : i32
    return %c0_i32, %c0_i32_0 : i32, i32
  }
  func.func @transform_7(%arg0: i32) -> (i32, i32) {
    %c0_i32 = arith.constant 0 : i32
    %c0_i32_0 = arith.constant 0 : i32
    %c0_i32_1 = arith.constant 0 : i32
    return %c0_i32, %c0_i32_0 : i32, i32
  }
  func.func @transform_8(%arg0: i32) -> (i32, i32) {
    %c0_i32 = arith.constant 0 : i32
    %c0_i32_0 = arith.constant 0 : i32
    %c0_i32_1 = arith.constant 0 : i32
    return %c0_i32, %c0_i32_0 : i32, i32
  }
  func.func @transform_9(%arg0: i32) -> (i32, i32) {
    %c0_i32 = arith.constant 0 : i32
    %c0_i32_0 = arith.constant 0 : i32
    return %c0_i32, %arg0 : i32, i32
  }
}

</mosaic_0001>

<bundles_post_ra>
// kernel: tpu_custom_call.1
= control target key start
LH: loop header
LB: loop body
LE: loop exit
PB: predicated region body
PF: predicated region fallthrough
CT: control target
= control target key end

     0   :  { %s873_s0 = inlined_call_operand.vmem [shape: f32[2,8], index: 0, kind: input, shape index: {}]   ;;  %s874_s1 = inlined_call_operand.vmem [shape: f32[32,2], index: 1, kind: input, shape index: {}]   ;;  %s875_s2 = inlined_call_operand.vmem [shape: f32[32,1], index: 2, kind: input, shape index: {}]   ;;  %s876_s3 = inlined_call_operand.vmem [shape: f32[32,32], index: 3, kind: input, shape index: {}]   ;;  %s877_s4 = inlined_call_operand.vmem [shape: f32[32,1], index: 4, kind: input, shape index: {}]   ;;  %s878_s5 = inlined_call_operand.vmem [shape: f32[32,32], index: 5, kind: input, shape index: {}]   ;;  %s879_s6 = inlined_call_operand.vmem [shape: f32[32,1], index: 6, kind: input, shape index: {}]   ;;  %s880_s7 = inlined_call_operand.vmem [shape: f32[1,32], index: 7, kind: input, shape index: {}]   ;;  %s881_s8 = inlined_call_operand.<no memory space> [shape: f32[1,1], index: 8, kind: input, shape index: {}]   ;;  %s882_s9 = inlined_call_operand.hbm [shape: f32[1,8], index: 9, kind: output, shape index: {}]  }
   0x1   :  { %v14_v0 = vstv %s881_s8 }
   0x2   :  { %15 = vst [vmem:[#allocation2] sm:$0x1] %v14_v0 }
   0x3   :  { %v40_v1 = vld [vmem:[%s875_s2] sm:$0xff]  ;;  %v692_v3 = vmov 0   ;;  %v41_v4 = vld [vmem:[%s875_s2 + $0x8] sm:$0xff] }
   0x4   :  { %v36_v2 = vld [vmem:[%s874_s1] sm:$0xff]  ;;  %613 = vset.pattern.permute.xlu1 %v692_v3  ;;  %612 = vset.pattern.permute.xlu0 %v692_v3  ;;  %v37_v5 = vld [vmem:[%s874_s1 + $0x8] sm:$0xff] }
   0x5   :  { %93 = vperm.xlu1 %613, %v40_v1   ;;  %46 = vperm.xlu0 %612, %v36_v2  }
   0x6   :  { %16 = vsyncpa [#allocation4], 0  ;;  %v39_v6 = vld [vmem:[%s874_s1 + $0x18] sm:$0xff]  ;;  %v693_v7 = vmov 1   ;;  %v38_v8 = vld [vmem:[%s874_s1 + $0x10] sm:$0xff]  ;;  %v694_v11 = vmov 0.0   ;;  %v65_v21 = vlaneseq }
   0x7   :  { %v42_v9 = vld [vmem:[%s875_s2 + $0x10] sm:$0xff]  ;;  %v43_v10 = vld [vmem:[%s875_s2 + $0x18] sm:$0xff]  ;;  %282 = vmatprep.mubr.f32.mxu0 %v694_v11  ;;  %419 = vmatprep.mubr.f32.mxu1 %v694_v11  ;;  %v181_v12 = vld [vmem:[%s877_s4] sm:$0xff]  ;;  %vm205_vm0 = vcmask 261120  }
   0x8   :  { %v182_v13 = vld [vmem:[%s877_s4 + $0x8] sm:$0xff]  ;;  %v183_v14 = vld [vmem:[%s877_s4 + $0x10] sm:$0xff]  ;;  %v319_v15 = vld [vmem:[%s879_s6] sm:$0xff]  ;;  %v801_v22 = vshrl.u32 %v65_v21, 7  ;;  %vm557_vm1 = vcmp.lt.s32.totalorder %v65_v21, 256 }
   0x9   :  { %98 = vperm.xlu1 %613, %v41_v4   ;;  %51 = vperm.xlu0 %612, %v37_v5   ;;  %v184_v16 = vld [vmem:[%s877_s4 + $0x18] sm:$0xff]  ;;  %v321_v17 = vld [vmem:[%s879_s6 + $0x10] sm:$0xff]  ;;  %v320_v18 = vld [vmem:[%s879_s6 + $0x8] sm:$0xff] }
   0xa   :  { %v453_v19 = vld [vmem:[#allocation2] sm:$0x1]  ;;  %v322_v20 = vld [vmem:[%s879_s6 + $0x18] sm:$0xff]  ;;  %v804_v23 = vsub.s32 0, %v801_v22  ;;  %v71_v24 = vsub.s32 2, %v801_v22  ;;  %v137_v26 = vsub.s32 1, %v801_v22 }
   0xb   :  { %v35_v25 = vld [vmem:[%s873_s0] sm:$0xf]  ;;  %v141_v27 = vsub.s32 3, %v801_v22 }
   0xc   :  { %v68_v30 = vrot.slane %v35_v25, %v804_v23  ;;  %v72_v31 = vrot.slane %v35_v25, %v71_v24  ;;  %v138_v32 = vrot.slane %v35_v25, %v137_v26 }
   0xd   :  { %614 = vset.pattern.permute.xlu1 %v693_v7  ;;  %61 = vperm.xlu0 %612, %v39_v6   ;;  %v142_v33 = vrot.slane %v35_v25, %v141_v27 }
   0xe   :  { %124 = vperm.xlu1 %614, %v37_v5   ;;  %v78_v34 = vrot.slane %v68_v30, %v804_v23  ;;  %v82_v37 = vrot.slane %v72_v31, %v804_v23  ;;  %v148_v39 = vrot.slane %v138_v32, %v137_v26  ;;  %v177_v32 = vld [vmem:[%s876_s3] sm:$0xff] }
   0xf   :  { %v152_v40 = vrot.slane %v142_v33, %v137_v26  ;;  %v178_v33 = vld [vmem:[%s876_s3 + $0x8] sm:$0xff] }
  0x11   :  { %616 = vset.pattern.permute.xlu0 %v693_v7 }
  0x12   :  { %615 = vset.pattern.permute.xlu1 %v692_v3  ;;  %120 = vperm.xlu0 %616, %v36_v2  }
  0x13   :  { %56 = vperm.xlu1 %615, %v38_v8  }
  0x16   :  { %128 = vperm.xlu0 %616, %v38_v8  }
  0x17   :  { %103 = vperm.xlu1 %615, %v42_v9  }
  0x1a   :  { %619 = vset.pattern.permute.xlu0 %v692_v3 }
  0x1b   :  { %108 = vperm.xlu1 %615, %v43_v10   ;;  %192 = vperm.xlu0 %619, %v182_v13  }
  0x1f   :  { %617 = vset.pattern.permute.xlu1 %v693_v7  ;;  %325 = vperm.xlu0 %619, %v319_v15  }
  0x20   :  { %132 = vperm.xlu1 %617, %v39_v6  }
  0x23   :  { %335 = vperm.xlu0 %619, %v321_v17  }
  0x24   :  { %618 = vset.pattern.permute.xlu1 %v692_v3 }
  0x25   :  { %187 = vperm.xlu1 %618, %v181_v12  }
  0x27   :  { %456 = vperm.xlu0 %619, %v453_v19  }
  0x29   :  { %197 = vperm.xlu1 %618, %v183_v14  }
  0x2d   :  { %202 = vperm.xlu1 %618, %v184_v16  }
  0x31   :  { %330 = vperm.xlu1 %618, %v320_v18  }
  0x35   :  { %340 = vperm.xlu1 %618, %v322_v20  }
  0x84   :  { %v94_v28 = vpop.permute.xlu1 %93  ;;  %v47_v29 = vpop.permute.xlu0 %46 }
  0x85   :  { %v83_v43 = vmul.f32 %v78_v34, %v47_v29  ;;  %v84_v45 = vmul.f32 %v82_v37, %v47_v29 }
  0x87   :  { %v111_v53 = vadd.f32 %v94_v28, %v83_v43  ;;  %v112_v54 = vadd.f32 %v94_v28, %v84_v45 }
  0x88   :  { %v99_v35 = vpop.permute.xlu1 %98  ;;  %v52_v36 = vpop.permute.xlu0 %51 }
  0x89   :  { %v85_v38 = vmul.f32 %v78_v34, %v52_v36  ;;  %v86_v41 = vmul.f32 %v82_v37, %v52_v36 }
  0x8b   :  { %v113_v46 = vadd.f32 %v99_v35, %v85_v38  ;;  %v114_v49 = vadd.f32 %v99_v35, %v86_v41  ;;  %v180_v35 = vld [vmem:[%s876_s3 + $0x18] sm:$0xff] }
  0x8c   :  { %v62_v42 = vpop.permute.xlu0 %61 }
  0x8d   :  { %v125_v44 = vpop.permute.xlu1 %124  ;;  %v89_v6 = vmul.f32 %v78_v34, %v62_v42  ;;  %v90_v7 = vmul.f32 %v82_v37, %v62_v42 }
  0x8e   :  { %v155_v47 = vmul.f32 %v148_v39, %v125_v44  ;;  %v156_v48 = vmul.f32 %v152_v40, %v125_v44 }
  0x90   :  { %v163_v50 = vadd.f32 %v155_v47, %v113_v46  ;;  %v164_v51 = vadd.f32 %v156_v48, %v114_v49 }
  0x91   :  { %v121_v52 = vpop.permute.xlu0 %120 }
  0x92   :  { %v153_v55 = vmul.f32 %v148_v39, %v121_v52  ;;  %v154_v56 = vmul.f32 %v152_v40, %v121_v52  ;;  %v57_v57 = vpop.permute.xlu1 %56  ;;  %620 = vtanh.f32 %v163_v50 }
  0x93   :  { %622 = vtanh.f32 %v164_v51  ;;  %v87_v62 = vmul.f32 %v78_v34, %v57_v57  ;;  %v88_v63 = vmul.f32 %v82_v37, %v57_v57  ;;  %v179_v34 = vld [vmem:[%s876_s3 + $0x10] sm:$0xff] }
  0x94   :  { %v161_v58 = vadd.f32 %v153_v55, %v111_v53  ;;  %v162_v59 = vadd.f32 %v154_v56, %v112_v54 }
  0x95   :  { %v129_v61 = vpop.permute.xlu0 %128 }
  0x96   :  { %624 = vtanh.f32 %v161_v58  ;;  %v104_v60 = vpop.permute.xlu1 %103  ;;  %v157_v1 = vmul.f32 %v148_v39, %v129_v61  ;;  %v158_v4 = vmul.f32 %v152_v40, %v129_v61 }
  0x97   :  { %626 = vtanh.f32 %v162_v59  ;;  %v115_v0 = vadd.f32 %v104_v60, %v87_v62  ;;  %v116_v3 = vadd.f32 %v104_v60, %v88_v63 }
  0x99   :  { %v165_v8 = vadd.f32 %v157_v1, %v115_v0  ;;  %v166_v10 = vadd.f32 %v158_v4, %v116_v3  ;;  %v315_v4 = vld [vmem:[%s878_s5] sm:$0xff] }
  0x9a   :  { %v109_v2 = vpop.permute.xlu1 %108  ;;  %v193_v41 = vpop.permute.xlu0 %192 }
  0x9b   :  { %v117_v14 = vadd.f32 %v109_v2, %v89_v6  ;;  %v118_v15 = vadd.f32 %v109_v2, %v90_v7  ;;  %628 = vtanh.f32 %v165_v8  ;;  %v317_v6 = vld [vmem:[%s878_s5 + $0x10] sm:$0xff]  ;;  %v318_v7 = vld [vmem:[%s878_s5 + $0x18] sm:$0xff] }
  0x9c   :  { %v621_v5 = vpop.eup %620  ;;  %630 = vtanh.f32 %v166_v10 }
  0x9d   :  { %v623_v9 = vpop.eup %622 }
  0x9e   :  { %v326_v8 = vpop.permute.xlu0 %325 }
  0x9f   :  { %v133_v12 = vpop.permute.xlu1 %132 }
  0xa0   :  { %v625_v13 = vpop.eup %624  ;;  %v159_v16 = vmul.f32 %v148_v39, %v133_v12  ;;  %v160_v17 = vmul.f32 %v152_v40, %v133_v12 }
  0xa1   :  { %v627_v18 = vpop.eup %626  ;;  %v585_v19 = vpack.c.bf16 %v621_v5, %v625_v13  ;;  %v316_v5 = vld [vmem:[%s878_s5 + $0x8] sm:$0xff] }
  0xa2   :  { %v167_v20 = vadd.f32 %v159_v16, %v117_v14  ;;  %v168_v24 = vadd.f32 %v160_v17, %v118_v15  ;;  %v583_v25 = vpack.c.bf16 %v623_v9, %v627_v18 }
  0xa4   :  { %632 = vtanh.f32 %v167_v20  ;;  %584 = vmatprep.subr.bf16.mxu0 %v583_v25  ;;  %v188_v36 = vpop.permute.xlu1 %187 }
  0xa5   :  { %634 = vtanh.f32 %v168_v24  ;;  %586 = vmatpush1.bf16.msra.mxu0 %v585_v19  ;;  %v629_v26 = vpop.eup %628 }
  0xa6   :  { %v631_v27 = vpop.eup %630 }
  0xa8   :  { %v198_v45 = vpop.permute.xlu1 %197 }
  0xac   :  { %v203_v51 = vpop.permute.xlu1 %202 }
  0xae   :  { %v633_v28 = vpop.eup %632 }
  0xaf   :  { %v635_v29 = vpop.eup %634  ;;  %v589_v30 = vpack.c.bf16 %v633_v28, %v629_v26 }
  0xb0   :  { %v587_v31 = vpack.c.bf16 %v635_v29, %v631_v27  ;;  %v331_v14 = vpop.permute.xlu1 %330 }
  0xb2   :  { %588 = vmatprep.subr.bf16.mxu0 %v587_v31 }
  0xb3   :  { %590 = vmatpush1.bf16.msra.mxu0 %v589_v30 }
  0xb4   :  { %v341_v26 = vpop.permute.xlu1 %340 }
  0xb6   :  { %574 = vmatmul.mubr.msk.f32.vlgmr.msra.gmra.mrb[0].mxu0 %vm205_vm0, %v177_v32 }
  0xb7   :  { %288 = vmatprep.mubr.f32.mxu0 %v694_v11 }
  0xba   :  { %575 = vmatmul.mubr.msk.f32.gmra.mrb[2].mxu0 %vm205_vm0, %v178_v33 }
  0xbb   :  { %294 = vmatprep.mubr.f32.mxu0 %v694_v11 }
  0xbe   :  { %576 = vmatmul.mubr.msk.f32.gmra.mrb[4].mxu0 %vm205_vm0, %v179_v34 }
  0xbf   :  { %300 = vmatprep.mubr.f32.mxu0 %v694_v11 }
  0xc2   :  { %577 = vmatmul.mubr.msk.f32.gmra.mrb[6].mxu0 %vm205_vm0, %v180_v35 }
  0xc3   :  { %530 = vmatprep.mubr.f32.mxu0 %v694_v11 }
 0x189   :  { %v284_v37 = vpop.f32.mrb[0].mxu0 }
 0x18a   :  { %v285_v38 = vadd.f32 %v284_v37, %v188_v36  ;;  %v286_v39 = vpop.f32.mrb[1].mxu0 }
 0x18b   :  { %v287_v40 = vadd.f32 %v286_v39, %v188_v36 }
 0x18c   :  { %636 = vtanh.f32 %v285_v38 }
 0x18d   :  { %v290_v42 = vpop.f32.mrb[2].mxu0  ;;  %638 = vtanh.f32 %v287_v40 }
 0x18e   :  { %v291_v43 = vadd.f32 %v290_v42, %v193_v41  ;;  %v292_v44 = vpop.f32.mrb[3].mxu0 }
 0x18f   :  { %v293_v46 = vadd.f32 %v292_v44, %v193_v41  ;;  %v695_v44 = vmov 1966171168  }
 0x190   :  { %640 = vtanh.f32 %v291_v43  ;;  %v452_v43 = vld [vmem:[%s880_s7] sm:$0x1] }
 0x191   :  { %642 = vtanh.f32 %v293_v46  ;;  %v296_v47 = vpop.f32.mrb[4].mxu0 }
 0x192   :  { %v297_v48 = vadd.f32 %v296_v47, %v198_v45  ;;  %v298_v49 = vpop.f32.mrb[5].mxu0 }
 0x193   :  { %v299_v50 = vadd.f32 %v298_v49, %v198_v45  ;;  %v541_v45 = vunpack.c.l.s4 %v695_v44 }
 0x194   :  { %644 = vtanh.f32 %v297_v48 }
 0x195   :  { %v302_v52 = vpop.f32.mrb[6].mxu0  ;;  %646 = vtanh.f32 %v299_v50  ;;  %v542_v47 = vunpack.c.0.s8 %v541_v45 }
 0x196   :  { %v303_v53 = vadd.f32 %v302_v52, %v203_v51  ;;  %v304_v54 = vpop.f32.mrb[7].mxu0  ;;  %v637_v56 = vpop.eup %636 }
 0x197   :  { %v305_v55 = vadd.f32 %v304_v54, %v203_v51  ;;  %v639_v57 = vpop.eup %638 }
 0x198   :  { %648 = vtanh.f32 %v303_v53  ;;  %v545_v53 = vsub.s32 %v542_v47, %v801_v22 }
 0x199   :  { %650 = vtanh.f32 %v305_v55 }
 0x19a   :  { %v641_v58 = vpop.eup %640 }
 0x19b   :  { %v643_v59 = vpop.eup %642  ;;  %v593_v60 = vpack.c.bf16 %v641_v58, %v637_v56 }
 0x19c   :  { %v591_v61 = vpack.c.bf16 %v643_v59, %v639_v57 }
 0x19e   :  { %592 = vmatprep.subr.bf16.mxu1 %v591_v61  ;;  %v645_v62 = vpop.eup %644 }
 0x19f   :  { %594 = vmatpush1.bf16.msra.mxu1 %v593_v60  ;;  %v647_v63 = vpop.eup %646 }
 0x1a2   :  { %v649_v0 = vpop.eup %648 }
 0x1a3   :  { %v651_v1 = vpop.eup %650  ;;  %v597_v2 = vpack.c.bf16 %v649_v0, %v645_v62 }
 0x1a4   :  { %v595_v3 = vpack.c.bf16 %v651_v1, %v647_v63 }
 0x1a6   :  { %596 = vmatprep.subr.bf16.mxu1 %v595_v3 }
 0x1a7   :  { %598 = vmatpush1.bf16.msra.mxu1 %v597_v2 }
 0x1aa   :  { %578 = vmatmul.mubr.msk.f32.vlgmr.msra.gmra.mrb[0].mxu1 %vm205_vm0, %v315_v4 }
 0x1ab   :  { %425 = vmatprep.mubr.f32.mxu1 %v694_v11 }
 0x1ae   :  { %579 = vmatmul.mubr.msk.f32.gmra.mrb[2].mxu1 %vm205_vm0, %v316_v5 }
 0x1af   :  { %431 = vmatprep.mubr.f32.mxu1 %v694_v11 }
 0x1b2   :  { %580 = vmatmul.mubr.msk.f32.gmra.mrb[4].mxu1 %vm205_vm0, %v317_v6 }
 0x1b3   :  { %437 = vmatprep.mubr.f32.mxu1 %v694_v11  ;;  %v336_v11 = vpop.permute.xlu0 %335 }
 0x1b6   :  { %581 = vmatmul.mubr.msk.f32.gmra.mrb[6].mxu1 %vm205_vm0, %v318_v7 }
 0x1b7   :  { %v457_v46 = vpop.permute.xlu0 %456 }
 0x1b8   :  { %v462_v48 = vrot.slane %v457_v46, %v804_v23 }
 0x27d   :  { %v421_v9 = vpop.f32.mrb[0].mxu1 }
 0x27e   :  { %v422_v10 = vadd.f32 %v421_v9, %v326_v8  ;;  %v423_v12 = vpop.f32.mrb[1].mxu1 }
 0x27f   :  { %v424_v13 = vadd.f32 %v423_v12, %v326_v8 }
 0x280   :  { %652 = vtanh.f32 %v422_v10 }
 0x281   :  { %v427_v15 = vpop.f32.mrb[2].mxu1  ;;  %654 = vtanh.f32 %v424_v13 }
 0x282   :  { %v428_v16 = vadd.f32 %v427_v15, %v331_v14  ;;  %v429_v17 = vpop.f32.mrb[3].mxu1 }
 0x283   :  { %v430_v18 = vadd.f32 %v429_v17, %v331_v14 }
 0x284   :  { %656 = vtanh.f32 %v428_v16 }
 0x285   :  { %658 = vtanh.f32 %v430_v18  ;;  %v433_v19 = vpop.f32.mrb[4].mxu1 }
 0x286   :  { %v434_v20 = vadd.f32 %v433_v19, %v336_v11  ;;  %v435_v24 = vpop.f32.mrb[5].mxu1 }
 0x287   :  { %v436_v25 = vadd.f32 %v435_v24, %v336_v11 }
 0x288   :  { %660 = vtanh.f32 %v434_v20 }
 0x289   :  { %v439_v27 = vpop.f32.mrb[6].mxu1  ;;  %662 = vtanh.f32 %v436_v25 }
 0x28a   :  { %v440_v28 = vadd.f32 %v439_v27, %v341_v26  ;;  %v441_v29 = vpop.f32.mrb[7].mxu1  ;;  %v653_v31 = vpop.eup %652 }
 0x28b   :  { %v442_v30 = vadd.f32 %v441_v29, %v341_v26  ;;  %v655_v32 = vpop.eup %654 }
 0x28c   :  { %664 = vtanh.f32 %v440_v28 }
 0x28d   :  { %666 = vtanh.f32 %v442_v30 }
 0x28e   :  { %v657_v33 = vpop.eup %656 }
 0x28f   :  { %v659_v34 = vpop.eup %658  ;;  %v601_v35 = vpack.c.bf16 %v657_v33, %v653_v31 }
 0x290   :  { %v599_v36 = vpack.c.bf16 %v659_v34, %v655_v32 }
 0x292   :  { %600 = vmatprep.subr.bf16.mxu0 %v599_v36  ;;  %v661_v37 = vpop.eup %660 }
 0x293   :  { %602 = vmatpush1.bf16.msra.mxu0 %v601_v35  ;;  %v663_v38 = vpop.eup %662 }
 0x296   :  { %v665_v39 = vpop.eup %664 }
 0x297   :  { %v667_v40 = vpop.eup %666  ;;  %v605_v41 = vpack.c.bf16 %v665_v39, %v661_v37 }
 0x298   :  { %v603_v42 = vpack.c.bf16 %v667_v40, %v663_v38 }
 0x29a   :  { %604 = vmatprep.subr.bf16.mxu0 %v603_v42 }
 0x29b   :  { %606 = vmatpush1.bf16.msra.mxu0 %v605_v41 }
 0x29e   :  { %582 = vmatmul.mubr.msk.f32.vlgmr.msra.gmra.mrb[8].mxu0 %vm205_vm0, %v452_v43 }
 0x371   :  { %v532_v49 = vpop.f32.mrb[8].mxu0 }
 0x372   :  { %v533_v50 = vadd.f32 %v532_v49, %v462_v48  ;;  %v534_v51 = vpop.f32.mrb[9].mxu0 }
 0x373   :  { %v535_v52 = vadd.f32 %v534_v51, %v462_v48 }
 0x375   :  { %v539_v54 = vcombine.low %v533_v50, %v535_v52 }
 0x377   :  { %v546_v55 = vrot.slane %v539_v54, %v545_v53 }
 0x379   :  { %v553_v56 = vrot.slane %v546_v55, %v545_v53 }
 0x37b   :  { %559 = vst.msk [vmem:[#allocation3] sm:$0x3] %vm557_vm1, %v553_v56 }
 0x37c   :  { %564 = vsyncadd [#allocation4], 16  ;;  %s696_s7 = smov [#allocation3]  }
 0x37d   :  { %s566_s10 = sshll.u32 %s696_s7, 4  ;;  %s567_s10 = int_to_ptr.vmem [resolvable:$true] %s566_s10 }
 0x37e   :  { %s668_s11 = scalar_lea.vmem %s567_s10, 16  ;;  %s672_s12 = scalar_lea.vmem %s567_s10, 32 }
 0x37f   :  { %p669_p0 = scmp.ne.s32.totalorder %s567_s10, %s668_s11  ;;  %p673_p1 = scmp.lt.s32.totalorder %s567_s10, %s567_s10 }
 0x380   :  { %p674_p2 = scmp.lt.s32.totalorder %s672_s12, %s668_s11 }
 0x382   :  { %p675_p3 = por %p674_p2, %p673_p1 }
 0x384   :  { %p676_p4 = pnand %p675_p3, %p669_p0 }
 0x386   :  { %679 = shalt.err (!%p676_p4)
}
 0x387   :  { %s680_s15 = scalar_lea.hbm %s882_s9, 16 }
 0x388   :  { %p681_p5 = scmp.ne.s32.totalorder %s882_s9, %s680_s15  ;;  %p684_p6 = scmp.lt.u32.totalorder %s680_s15, %s882_s9 }
 0x38a   :  { %p686_p7 = pnand %p684_p6, %p681_p5 }
 0x38c   :  { %689 = shalt.err (!%p686_p7)
}
 0x38d   :  { %569 = dma.vmem_to_hbm [thread:$0]  %s567_s10, 16, %s882_s9, [#allocation4]  }
 0x38e   :  { %690 = dma.done.wait [#allocation4], 32  }
 0x38f   :  { %691 = vsyncadd [#allocation4], 4294967264 }
 0x390   :  { %573 = vsyncpa [#allocation4], 1 }

</bundles_post_ra>
